<compile_context>
chip_gen: v5e
topology: v5e:2x2
jax: 0.10.0
libtpu: 0.0.40
codegen_flags: <defaults>
</compile_context>

<pallas_src>
import jax
import jax.numpy as jnp
from jax.experimental import pallas as pl
from jax.experimental.pallas import tpu as pltpu

_LANE = 128
_TILE_BUDGET_BYTES = 4 * 1024 * 1024   # target input-tile footprint per grid step
_VMEM_LIMIT_BYTES = 48 * 1024 * 1024   # explicit scoped-VMEM cap, safe on v5e/v6e/v7x


def _round_up(a: int, b: int) -> int:
    return -(-a // b) * b


def _largest_divisor_leq(n: int, cap: int) -> int:
    cap = int(max(1, min(n, cap)))
    for d in range(cap, 0, -1):
        if n % d == 0:
            return d
    return 1


def _make_l2norm_kernel(eps: float):
    def l2norm_kernel(x_ref, w_ref, o_ref):
        # x_ref / o_ref: (nb, C, hw_tile)   w_ref: (1, C, 1) resident block
        w = w_ref[...].astype(jnp.float32)                 # hoisted once per step
        x = x_ref[...].astype(jnp.float32)                 # (nb, C, hw_tile)
        # Per-pixel sum of squares over channels.
        sumsq = jnp.sum(x * x, axis=1, keepdims=True)      # (nb, 1, hw_tile)
        norm = jnp.sqrt(sumsq) + eps                       # eps after sqrt (module semantics)
        inv = pl.reciprocal(norm, approx=False)            # exact 1/x (HBM-bound: free)
        o_ref[...] = (x * inv * w).astype(o_ref.dtype)

    return l2norm_kernel


def l2norm(x: jax.Array, weight: jax.Array, eps: float = 1e-10) -> jax.Array:
    """x: (N, C, H, W) NCHW, weight: (C,). Returns (N, C, H, W)."""
    N, C, H, W = x.shape
    HW = H * W
    itemsize = jnp.dtype(x.dtype).itemsize
    # Sublane packing multiple for this dtype (f32 -> 8, bf16 -> 16, i8/fp8 -> 32):
    # only used for VMEM footprint accounting (channels are never tiled).
    pack = 8 * max(1, 4 // itemsize)
    c_pad = _round_up(C, pack)

    x3 = x.reshape(N, C, HW)                               # free (contiguous) reshape

    per_image_bytes = c_pad * _round_up(max(HW, 1), _LANE) * itemsize

    if per_image_bytes <= _TILE_BUDGET_BYTES:
        # Whole-image spatial slab per block: full last dim -> legal for any HW,
        # no wrapper pad/slice.  Batch images (nb) to reach MiB-scale tiles.
        hw_tile = HW
        padded_HW = HW
        nb = _largest_divisor_leq(N, _TILE_BUDGET_BYTES // per_image_bytes)
    else:
        # Large images: tile the spatial axis in lane-dense multiples of 128.
        nb = 1
        padded_HW = _round_up(HW, _LANE)
        n_blocks = padded_HW // _LANE
        bytes_per_block = c_pad * _LANE * itemsize
        max_blocks = max(1, _TILE_BUDGET_BYTES // bytes_per_block)
        bpt = _largest_divisor_leq(n_blocks, max_blocks)
        if bpt * 4 < min(max_blocks, n_blocks):
            # No reasonable exact divisor: accept minimal lane-block padding so
            # tiles stay large (per-step overhead would dominate otherwise).
            bpt = min(max_blocks, n_blocks)
            n_blocks = _round_up(n_blocks, bpt)
            padded_HW = n_blocks * _LANE
        hw_tile = bpt * _LANE

    if padded_HW != HW:
        # Rare path (only for very large ragged images).  Padded pixels reduce
        # to norm = eps > 0, so no NaN/Inf; they are sliced off below.
        x3 = jnp.pad(x3, ((0, 0), (0, 0), (0, padded_HW - HW)))

    n_grid = N // nb
    s_grid = padded_HW // hw_tile
    # v7x has 2 TensorCores: keep >= 2 grid steps whenever possible so
    # ("parallel","parallel") can actually shard work across them.
    if n_grid * s_grid == 1 and N > 1:
        nb = _largest_divisor_leq(N, max(1, N // 2))
        n_grid = N // nb

    # Weight as a (1, C, 1) f32 column; constant index_map -> stays resident.
    w3 = weight.astype(jnp.float32).reshape(1, C, 1)

    out3 = pl.pallas_call(
        _make_l2norm_kernel(eps),
        out_shape=jax.ShapeDtypeStruct((N, C, padded_HW), x.dtype),
        grid_spec=pltpu.PrefetchScalarGridSpec(
            num_scalar_prefetch=0,
            grid=(n_grid, s_grid),
            in_specs=[
                pl.BlockSpec((nb, C, hw_tile), lambda n, s: (n, 0, s)),
                pl.BlockSpec((1, C, 1), lambda n, s: (0, 0, 0)),   # resident weight
            ],
            out_specs=pl.BlockSpec((nb, C, hw_tile), lambda n, s: (n, 0, s)),
        ),
        compiler_params=pltpu.CompilerParams(
            dimension_semantics=("parallel", "parallel"),
            vmem_limit_bytes=_VMEM_LIMIT_BYTES,
        ),
    )(x3, w3)

    if padded_HW != HW:
        out3 = out3[:, :, :HW]
    return out3.reshape(N, C, H, W)


def l2norm_reference(x, weight, eps=1e-10):
    xf = x.astype(jnp.float32)
    norm = jnp.sqrt(jnp.sum(xf * xf, axis=1, keepdims=True)) + eps
    return (weight[None, :, None, None] * xf / norm).astype(x.dtype)


if __name__ == "__main__":
    # Module params: n_channels=4, scale(gamma)=20.0, eps=1e-10
    n_channels = 4
    gamma = 20.0
    eps = 1e-10

    # Deterministic parameter init: init.constant_(weight, gamma)
    weight = jnp.full((n_channels,), gamma, dtype=jnp.float32)

    key = jax.random.PRNGKey(0)
    k1, k2, k3 = jax.random.split(key, 3)

    # Main case (NCHW): batch=2, channels=4, spatial=16x16
    x = jax.random.normal(k1, (2, n_channels, 16, 16), dtype=jnp.float32)
    out = jax.block_until_ready(l2norm(x, weight, eps))
    ref = l2norm_reference(x, weight, eps)
    assert out.shape == x.shape
    assert jnp.allclose(out, ref, atol=1e-5, rtol=1e-5), "mismatch vs reference"

    # Ragged spatial case (HW=100): exercises the full-HW (no-padding) path.
    x2 = jax.random.normal(k2, (1, n_channels, 10, 10), dtype=jnp.float32)
    out2 = jax.block_until_ready(l2norm(x2, weight, eps))
    ref2 = l2norm_reference(x2, weight, eps)
    assert out2.shape == x2.shape
    assert jnp.allclose(out2, ref2, atol=1e-5, rtol=1e-5), "mismatch vs reference (ragged)"

    # Batched-N case: exercises nb > 1 (several images per grid step).
    x3 = jax.random.normal(k3, (4, n_channels, 16, 16), dtype=jnp.float32)
    out3 = jax.block_until_ready(l2norm(x3, weight, eps))
    ref3 = l2norm_reference(x3, weight, eps)
    assert out3.shape == x3.shape
    assert jnp.allclose(out3, ref3, atol=1e-5, rtol=1e-5), "mismatch vs reference (batched)"

    print("KERNEL_OK")
</pallas_src>

<mosaic_0001>
module attributes {stable_mosaic.version = 11 : i64} {
  func.func @l2norm_kernel(%arg0: i32, %arg1: i32, %arg2: memref<1x4x256xf32, #tpu.memory_space<vmem>>, %arg3: memref<1x4x1xf32, #tpu.memory_space<vmem>>, %arg4: memref<1x4x256xf32, #tpu.memory_space<vmem>>) attributes {dimension_semantics = [#tpu.dimension_semantics<parallel>, #tpu.dimension_semantics<parallel>], iteration_bounds = array<i64: 2, 1>, scalar_prefetch = 0 : i64, scratch_operands = 0 : i64, tpu.core_type = #tpu.core_type<tc>, window_params = [{transform_indices = @transform_0, window_bounds = array<i64: 1, 4, 256>}, {pipeline_mode = #tpu.pipeline_mode<synchronous>, transform_indices = @transform_1, window_bounds = array<i64: 1, 4, 1>}, {transform_indices = @transform_2, window_bounds = array<i64: 1, 4, 256>}]} {
    %c0 = arith.constant 0 : index
    %c0_0 = arith.constant 0 : index
    %c0_1 = arith.constant 0 : index
    %0 = vector.load %arg3[%c0, %c0_0, %c0_1] : memref<1x4x1xf32, #tpu.memory_space<vmem>>, vector<1x4x1xf32>
    %c0_2 = arith.constant 0 : index
    %c0_3 = arith.constant 0 : index
    %c0_4 = arith.constant 0 : index
    %1 = vector.load %arg2[%c0_2, %c0_3, %c0_4] : memref<1x4x256xf32, #tpu.memory_space<vmem>>, vector<1x4x256xf32>
    %2 = arith.mulf %1, %1 : vector<1x4x256xf32>
    %cst = arith.constant dense<0.000000e+00> : vector<1x256xf32>
    %3 = vector.multi_reduction <add>, %2, %cst [1] : vector<1x4x256xf32> to vector<1x256xf32>
    %4 = vector.shape_cast %3 : vector<1x256xf32> to vector<1x1x256xf32>
    %5 = math.sqrt %4 : vector<1x1x256xf32>
    %cst_5 = arith.constant 1.000000e-10 : f32
    %6 = vector.broadcast %cst_5 : f32 to vector<1x1x256xf32>
    %7 = arith.addf %5, %6 : vector<1x1x256xf32>
    %8 = tpu.reciprocal %7 : vector<1x1x256xf32> -> vector<1x1x256xf32>
    %9 = vector.broadcast %8 : vector<1x1x256xf32> to vector<1x4x256xf32>
    %10 = arith.mulf %1, %9 : vector<1x4x256xf32>
    %11 = vector.broadcast %0 : vector<1x4x1xf32> to vector<1x4x256xf32>
    %12 = arith.mulf %10, %11 : vector<1x4x256xf32>
    %c0_6 = arith.constant 0 : index
    %c0_7 = arith.constant 0 : index
    %c0_8 = arith.constant 0 : index
    %13 = vector.load %arg4[%c0_6, %c0_7, %c0_8] : memref<1x4x256xf32, #tpu.memory_space<vmem>>, vector<1x4x256xf32>
    tpu.vector_store %arg4[%c0_6, %c0_7, %c0_8], %12 {strides = array<i32>} : memref<1x4x256xf32, #tpu.memory_space<vmem>>, vector<1x4x256xf32>,
    return
  }
  func.func @transform_0(%arg0: i32, %arg1: i32) -> (i32, i32, i32) {
    %c0_i32 = arith.constant 0 : i32
    %c0_i32_0 = arith.constant 0 : i32
    return %arg0, %c0_i32, %arg1 : i32, i32, i32
  }
  func.func @transform_1(%arg0: i32, %arg1: i32) -> (i32, i32, i32) {
    %c0_i32 = arith.constant 0 : i32
    %c0_i32_0 = arith.constant 0 : i32
    %c0_i32_1 = arith.constant 0 : i32
    %c0_i32_2 = arith.constant 0 : i32
    return %c0_i32, %c0_i32_0, %c0_i32_1 : i32, i32, i32
  }
  func.func @transform_2(%arg0: i32, %arg1: i32) -> (i32, i32, i32) {
    %c0_i32 = arith.constant 0 : i32
    %c0_i32_0 = arith.constant 0 : i32
    return %arg0, %c0_i32, %arg1 : i32, i32, i32
  }
}

</mosaic_0001>

<bundles_post_ra>
// kernel: tpu_custom_call.1
= control target key start
LH: loop header
LB: loop body
LE: loop exit
PB: predicated region body
PF: predicated region fallthrough
CT: control target
= control target key end

     0   :  { %7 = vsyncpa [#allocation3], 0  ;;  %s736_s0 = inlined_call_operand.hbm [shape: f32[2,4,256], index: 0, kind: input, shape index: {}]   ;;  %s737_s1 = inlined_call_operand.vmem [shape: f32[1,4,1], index: 1, kind: input, shape index: {}]   ;;  %s738_s2 = inlined_call_operand.hbm [shape: f32[2,4,256], index: 2, kind: output, shape index: {}]  }
   0x1   :  { %9 = vsyncpa [#allocation3 + $0x1], 0 }
   0x2   :  { %10 = vsyncpa [#allocation4], 0 }
   0x3   :  { %12 = vsyncpa [#allocation4 + $0x1], 0  ;;  %s601_s9 = smov 0   ;;  %s603_s10 = smov 0  }
   0x4   :  { %s605_s11 = smov 0   ;;  %s607_s12 = smov 0  }
   0x5   :  { %s609_s13 = smov 0   ;;  %s611_s14 = smov 0  }
   0x6 LB: > { %s380_s15 = sadd.s32 4294967295, %s582_s14   ;;  %s381_s16 = sadd.s32 4294967294, %s582_s14   ;;  %s582_s14 = sphi %s611_s14, %s18_s14   ;;  %s578_s13 = sphi %s609_s13, %s747_s13   ;;  %s574_s12 = sphi %s607_s12, %s746_s12   ;;  %s570_s11 = sphi %s605_s11, %s745_s11   ;;  %s566_s10 = sphi %s603_s10, %s744_s10   ;;  %s562_s9 = sphi %s601_s9, %s743_s9  }
   0x7   : > { %s30_s17 = sadd.s32 1, %s578_s13  ;;  %s39_s18 = sadd.s32 1, %s570_s11 }
   0x8   : > { %p32_p0 = scmp.ge.s32.totalorder %s30_s17, 2  ;;  %p46_p1 = scmp.ne.s32.totalorder %s570_s11, %s566_s10 }
   0x9   : > { %p47_p2 = scmp.eq.s32.totalorder %s582_s14, 0  ;;  %p52_p3 = scmp.ne.s32.totalorder %s566_s10, %s562_s9 }
   0xa   : > { %s749_s17 = smov (%p32_p0, %s30_s17), 0  ;;  %p53_p5 = scmp.eq.s32.totalorder %s380_s15, 0 }
   0xb   : > { %p642_p4 = por %p47_p2, %p46_p1  ;;  %s34_s20 = ssub.s32 %s578_s13, %s749_s17 }
   0xc   : > { %p99_p6 = scmp.eq.s32.totalorder %s380_s15, 1  ;;  %p37_p7 = scmp.eq.s32.totalorder %s34_s20, 0 }
   0xd   : > { %p648_p8 = por %p53_p5, %p52_p3  ;;  %p105_p10 = scmp.eq.s32.totalorder %s381_s16, 1 }
   0xe   : > { %p652_p9 = por %p99_p6, %p46_p1  ;;  %p383_p12 = scmp.ge.s32.totalorder %s582_s14, 2 }
   0xf   : > { %s657_s23 = scalar_select %p37_p7, %s570_s11, %s39_s18  }
  0x10   : > { %p659_p11 = por %p105_p10, %p52_p3  ;;  %p409_p13 = scmp.lt.s32.totalorder %s582_s14, 2 }
  0x11   : > { %s128_s25 = sand.u32 1, %s570_s11   ;;  %s395_s27 = sshll.u32 %s578_s13, 3 }
  0x12   : > { %s384_s26 = sshll.u32 %s128_s25, 3  ;;  %s139_s30 = scalar_lea.hbm %s736_s0, %s395_s27 }
  0x13   : > { %s132_s3 = scalar_lea.vmem [#allocation2], %s384_s26  ;;  %s141_s5 = sshll.u32 %s139_s30, 4  ;;  %s142_s5 = int_to_ptr.hbm [resolvable:$true] %s141_s5 }
  0x14   : > { %s143_s4 = sshll.u32 %s132_s3, 4  ;;  %p402_p0 = pnand %p409_p13, %p642_p4  ;;  %s144_s4 = int_to_ptr.vmem [resolvable:$true] %s143_s4 }
  0x15   : > { %p387_p1 = scmp.ge.s32.totalorder %s582_s14, 1  ;;  %p148_p2 = scmp.lt.s32.totalorder %s582_s14, 3 }
  0x16   : > { %s129_s6 = scalar_lea.sflag [#allocation3], %s128_s25 }
  0x17   : > { %404 = dma.hbm_to_vmem [thread:$0]  (!%p402_p0), %s142_s5, 128, %s144_s4, %s129_s6  }
  0x18   : > { %p149_p3 = pnand %p387_p1, %p148_p2 }
  0x19   : > { %s675_s7 = sand.u32 (!%p149_p3), 1, %s566_s10  }
  0x1a   : > { %152 = sbr.rel (%p149_p3) target bundleno = 156 (0x9c), region = 28  ;;  %s388_s8 = sshll.u32 (!%p149_p3), %s675_s7, 3 }
  0x1b   : > { %s155_s15 = scalar_lea.sflag (!%p149_p3), [#allocation3], %s675_s7  ;;  %s158_s16 = scalar_lea.vmem (!%p149_p3), [#allocation2], %s388_s8 }
  0x1f   : > { %553 = dma.done.wait (%p648_p8), %s155_s15, 128  }
  0x20   : > { %555 = vsyncadd (%p648_p8), %s155_s15, 4294967168  ;;  %v584_v0 = vmov 0   ;;  %v182_v1 = vld [vmem:[%s737_s1] sm:$0xf]  ;;  %v688_v2 = vld [vmem:[%s158_s16] sm:$0xff]  ;;  %vm191_vm0 = vcmask 1043456  }
  0x21   : > { %461 = vset.pattern.permute.xlu0 %v584_v0  ;;  %v184_v3 = vmul.f32 %v688_v2, %v688_v2  ;;  %v585_v63 = vmov 839922192   ;;  %s396_s20 = sshll.u32 %s574_s12, 3  ;;  %s179_s27 = scalar_lea.vmem [#allocation5], %s388_s8 }
  0x22   : > { %268 = vperm.xlu0 %461, %v182_v1   ;;  %v271_v0 = vunpack.c.l.s4 %v585_v63  ;;  %s291_s26 = scalar_lea.hbm %s738_s2, %s396_s20  ;;  %s293_s28 = sshll.u32 %s179_s27, 4  ;;  %s294_s28 = int_to_ptr.vmem [resolvable:$true] %s293_s28 }
  0x23   : > { %186 = vst [vmem:[#allocation1] ss:$2 sm:$0xff] %v184_v3  ;;  %s295_s29 = sshll.u32 %s291_s26, 4  ;;  %s278_s12 = scalar_lea.sflag [#allocation4], %s675_s7  ;;  %s296_s29 = int_to_ptr.hbm [resolvable:$true] %s295_s29 }
  0x24   : > { %v272_v3 = vunpack.c.0.s8 %v271_v0  ;;  %s514_s30 = sshra.s32 %s296_s29, 4  ;;  %s520_s6 = scalar_lea.hbm %s738_s2, 16  ;;  %s515_s30 = int_to_ptr.hbm [resolvable:$true] %s514_s30 }
  0x25   : > { %s516_s3 = scalar_lea.hbm %s515_s30, 8  ;;  %p521_p7 = scmp.lt.s32.totalorder %s515_s30, %s738_s2 }
  0x26   : > { %p517_p4 = scmp.ne.s32.totalorder %s515_s30, %s516_s3  ;;  %p522_p8 = scmp.lt.s32.totalorder %s520_s6, %s516_s3 }
  0x28   : > { %p518_p5 = pnand %p517_p4, %p652_p9  ;;  %p523_p10 = por %p522_p8, %p521_p7 }
  0x2a   : > { %v187_v4 = vld.sshfl [vmem:[#allocation1] sm:$0xff pattern:$0x75316420]  ;;  %v188_v5 = vld.sshfl [vmem:[#allocation1 + $0x8] sm:$0xff pattern:$0x75316420]  ;;  %p519_p6 = pneg %p518_p5 }
  0x2b   : > { %v192_v6 = vsel %vm191_vm0, %v187_v4, 0.0  ;;  %v199_v7 = vsel %vm191_vm0, %v188_v5, 0.0 }
  0x2c   : > { %v200_v8 = vrot.slane %v199_v7, 4  ;;  %v193_v9 = vrot.slane %v192_v6, 4  ;;  %p524_p13 = pnand %p523_p10, %p519_p6 }
  0x2e   : > { %v201_v10 = vadd.f32 %v200_v8, %v199_v7  ;;  %v194_v11 = vadd.f32 %v193_v9, %v192_v6 }
  0x30   : > { %v202_v12 = vrot.slane %v201_v10, 2  ;;  %v195_v13 = vrot.slane %v194_v11, 2 }
  0x32   : > { %v203_v14 = vadd.f32 %v202_v12, %v201_v10  ;;  %v196_v15 = vadd.f32 %v195_v13, %v194_v11 }
  0x34   : > { %v204_v16 = vrot.slane %v203_v14, 1  ;;  %v197_v17 = vrot.slane %v196_v15, 1 }
  0x36   : > { %v205_v18 = vadd.f32 %v204_v16, %v203_v14  ;;  %v198_v19 = vadd.f32 %v197_v17, %v196_v15 }
  0x38   : > { %462 = vrsqrt.f32 %v205_v18  ;;  %vm225_vm1 = vcmp.eq.f32.partialorder %v205_v18, inf  ;;  %v228_v33 = vand.u32 2147483648, %v205_v18  ;;  %vm227_vm2 = vcmp.eq.f32.partialorder %v205_v18, 0.0 }
  0x39   : > { %464 = vrsqrt.f32 %v198_v19  ;;  %vm213_vm3 = vcmp.eq.f32.partialorder %v198_v19, inf  ;;  %v216_v36 = vand.u32 2147483648, %v198_v19  ;;  %vm215_vm4 = vcmp.eq.f32.partialorder %v198_v19, 0.0 }
  0x3e   : > { %v463_v20 = vpop.eup %462 }
  0x3f   : > { %v219_v21 = vmul.f32 %v463_v20, %v205_v18  ;;  %v465_v22 = vpop.eup %464 }
  0x40   : > { %v207_v23 = vmul.f32 %v465_v22, %v198_v19 }
  0x41   : > { %v220_v24 = vmul.f32 %v463_v20, %v219_v21 }
  0x42   : > { %v208_v25 = vmul.f32 %v465_v22, %v207_v23 }
  0x43   : > { %v221_v26 = vmul.f32 0.5, %v220_v24 }
  0x44   : > { %v209_v27 = vmul.f32 0.5, %v208_v25 }
  0x45   : > { %v222_v28 = vsub.f32 1.5, %v221_v26 }
  0x46   : > { %v210_v29 = vsub.f32 1.5, %v209_v27 }
  0x47   : > { %v223_v30 = vmul.f32 %v463_v20, %v222_v28 }
  0x48   : > { %v211_v31 = vmul.f32 %v465_v22, %v210_v29 }
  0x49   : > { %v224_v32 = vmul.f32 %v223_v30, %v205_v18 }
  0x4a   : > { %v212_v34 = vmul.f32 %v211_v31, %v198_v19 }
  0x4b   : > { %v226_v35 = vsel %vm225_vm1, %v205_v18, %v224_v32 }
  0x4c   : > { %v229_v37 = vsel %vm227_vm2, %v228_v33, %v226_v35  ;;  %v214_v38 = vsel %vm213_vm3, %v198_v19, %v212_v34 }
  0x4d   : > { %v231_v39 = vadd.f32 1e-10, %v229_v37  ;;  %v217_v40 = vsel %vm215_vm4, %v216_v36, %v214_v38 }
  0x4e   : > { %v230_v41 = vadd.f32 1e-10, %v217_v40 }
  0x4f   : > { %466 = vrcp.f32 %v231_v39  ;;  %vm251_vm5 = vweird.f32 %v231_v39  ;;  %v257_v49 = vand.u32 2147483648, %v231_v39  ;;  %v255_v52 = vand.u32 2147483647, %v231_v39 }
  0x50   : > { %468 = vrcp.f32 %v230_v41  ;;  %vm237_vm8 = vweird.f32 %v230_v41  ;;  %v243_v53 = vand.u32 2147483648, %v230_v41  ;;  %v241_v56 = vand.u32 2147483647, %v230_v41 }
  0x51   : > { %v258_v54 = vor.u32 1.1754944e-38, %v257_v49  ;;  %vm256_vm10 = vcmp.eq.f32.partialorder %v255_v52, 8.507059e+37 }
  0x52   : > { %v244_v58 = vor.u32 1.1754944e-38, %v243_v53  ;;  %vm242_vm12 = vcmp.eq.f32.partialorder %v241_v56, 8.507059e+37 }
  0x55   : > { %v467_v42 = vpop.eup %466 }
  0x56   : > { %v247_v43 = vmul.f32 %v467_v42, %v231_v39  ;;  %v469_v44 = vpop.eup %468  ;;  %vm252_vm6 = vweird.f32 %v467_v42 }
  0x57   : > { %v233_v45 = vmul.f32 %v469_v44, %v230_v41  ;;  %vm253_vm7 = vmor %vm251_vm5, %vm252_vm6  ;;  %vm238_vm9 = vweird.f32 %v469_v44 }
  0x58   : > { %v248_v46 = vsub.f32 1.0, %v247_v43  ;;  %vm239_vm11 = vmor %vm237_vm8, %vm238_vm9 }
  0x59   : > { %v234_v47 = vsub.f32 1.0, %v233_v45 }
  0x5a   : > { %v249_v48 = vmul.f32 %v467_v42, %v248_v46 }
  0x5b   : > { %v235_v50 = vmul.f32 %v469_v44, %v234_v47 }
  0x5c   : > { %v250_v51 = vadd.f32 %v467_v42, %v249_v48 }
  0x5d   : > { %v236_v55 = vadd.f32 %v469_v44, %v235_v50 }
  0x5e   : > { %v254_v57 = vsel %vm253_vm7, %v467_v42, %v250_v51 }
  0x5f   : > { %v259_v59 = vsel %vm256_vm10, %v258_v54, %v254_v57  ;;  %v240_v60 = vsel %vm239_vm11, %v469_v44, %v236_v55 }
  0x60   : > { %v262_v61 = vrot.slane %v259_v59, 4  ;;  %v245_v62 = vsel %vm242_vm12, %v244_v58, %v240_v60 }
  0x62   : > { %v263_v1 = vsel %vm191_vm0, %v245_v62, %v262_v61 }
  0x63   : > { %v265_v4 = vmul.f32 %v263_v1, %v688_v2 }
  0x94   : > { %v269_v5 = vpop.permute.xlu0 %268 }
  0x95   : > { %v273_v6 = vperm.slane %v269_v5, %v272_v3 }
  0x97   : > { %v275_v7 = vmul.f32 %v273_v6, %v265_v4 }
  0x99   : > { %276 = vst [vmem:[%s179_s27] sm:$0xff] %v275_v7 }
  0x9a   : > { %527 = shalt.err (!%p524_p13)
}
  0x9b   : > { %399 = dma.vmem_to_hbm [thread:$0]  (%p652_p9), %s294_s28, 128, %s296_s29, %s278_s12  }
  0x9c PF: > { %s307_s7 = sand.u32 1, %s562_s9   ;;  %p406_p0 = pnand %p383_p12, %p659_p11 }
  0x9d   : > { %s308_s16 = scalar_lea.sflag [#allocation4], %s307_s7 }
  0x9e   : > { %p407_p1 = pneg %p406_p0 }
  0xa0   : > { %557 = dma.done.wait (%p407_p1), %s308_s16, 128  }
  0xa1   : > { %559 = vsyncadd (%p407_p1), %s308_s16, 4294967168  ;;  %s18_s14 = sadd.s32 1, %s582_s14   ;;  %s743_s9 = smov %s566_s10 }
  0xa2   : > { %p15_p2 = scmp.ge.s32.totalorder %s18_s14, 4   ;;  %s744_s10 = smov %s570_s11 }
  0xa3   : > { %s745_s11 = smov %s657_s23  ;;  %s746_s12 = smov %s578_s13 }
  0xa4   : > { %s747_s13 = smov %s749_s17  ;;  %17 = sbr.rel (!%p15_p2) target bundleno = 6 (0x6), region = 73 }
  0xa9   :  { %314 = vsyncpa [#allocation3], 1 }
  0xaa   :  { %316 = vsyncpa [#allocation3 + $0x1], 1 }
  0xab   :  { %317 = vsyncpa [#allocation4], 1 }
  0xac   :  { %319 = vsyncpa [#allocation4 + $0x1], 1 }

</bundles_post_ra>
